<compile_context>
chip_gen: v6e
topology: v6e:2x2x1
jax: 0.10.0
libtpu: 0.0.40
codegen_flags: <defaults>
</compile_context>

<pallas_src>
import jax
import jax.numpy as jnp
from jax import lax
from jax.experimental import pallas as pl
from jax.experimental.pallas import tpu as pltpu

EPS = 1e-5

# packed-parameter layout (SMEM f32[16])
#   [0:4]   conv1 weight (row-major 2x2)          (conv1 bias not needed:
#   [4]     BN gamma                               it cancels against the
#   [5]     BN beta                                BN mean subtraction)
#   [6:10]  conv2 weight (row-major 2x2)
#   [10]    conv2 bias
#   [11:16] zero padding


def _fused_kernel(x_ref, p_ref, o_ref):
    # x_ref: (N, H, W) f32 VMEM;  p_ref: (16,) f32 SMEM;
    # o_ref: (N, 2*Ho2, 2*Wo2) f32 VMEM  (dilated output; even phase is valid)
    x = x_ref[...]
    N, H, W = x.shape
    Ho, Wo = H - 1, W - 1            # conv1 out spatial (k=2, stride 1)
    Hp, Wp = Ho // 2, Wo // 2        # avg-pool out spatial (floor mode)
    Ho2, Wo2 = Hp - 1, Wp - 1        # conv2 out spatial
    Hd, Wd = 2 * Ho2, 2 * Wo2        # dilated conv2 extent

    # ---- conv1 (2x2, 1->1): 4 unit-stride shifted slices, bias omitted ----
    y = x[:, 0:Ho, 0:Wo] * p_ref[0]
    y = y + x[:, 0:Ho, 1:1 + Wo] * p_ref[1]
    y = y + x[:, 1:1 + Ho, 0:Wo] * p_ref[2]
    y = y + x[:, 1:1 + Ho, 1:1 + Wo] * p_ref[3]

    # ---- BatchNorm2d(1) training-mode batch stats, one pass (sum, sumsq) ----
    cnt = float(N * Ho * Wo)
    s = jnp.sum(y)
    ss = jnp.sum(y * y)
    mean = s / cnt
    var = jnp.maximum(ss / cnt - mean * mean, 0.0)
    # Affine is deferred: folded through the (affine) pool + conv2 below.

    # ---- AvgPool2d(2) + conv2, fused as one dilated shifted-add pass -------
    # 2x2 window sums at every position (unit-stride shifted adds, no stride-2):
    sw = y[:, :, 0:Wo - 1] + y[:, :, 1:Wo]          # (N, Ho,   Wo-1)
    s2 = sw[:, 0:Ho - 1, :] + sw[:, 1:Ho, :]        # (N, Ho-1, Wo-1)
    # s2[n, 2i, 2j] == 4 * avgpool(y)[n, i, j]
    # conv2 (no bias) on the dilated grid: even offsets are static slices.
    z4 = s2[:, 0:Hd, 0:Wd] * p_ref[6]
    z4 = z4 + s2[:, 0:Hd, 2:2 + Wd] * p_ref[7]
    z4 = z4 + s2[:, 2:2 + Hd, 0:Wd] * p_ref[8]
    z4 = z4 + s2[:, 2:2 + Hd, 2:2 + Wd] * p_ref[9]
    # z4[n, 2p, 2q] == 4 * conv2_nobias(avgpool(y))[n, p, q]

    # ---- fold deferred BN affine + conv2 bias, then sigmoid; single store ---
    scale = p_ref[4] * lax.rsqrt(var + EPS)          # gamma * rsqrt(var+eps)
    shift = p_ref[5] - mean * scale                  # beta - mean*scale
    sum_w2 = p_ref[6] + p_ref[7] + p_ref[8] + p_ref[9]
    bias_out = shift * sum_w2 + p_ref[10]
    o_ref[...] = jax.nn.sigmoid((scale * 0.25) * z4 + bias_out)


def pack_params(w1, gamma, beta, w2, b2):
    # Done ONCE at setup (hoisted out of the jitted hot path).
    return jnp.concatenate([
        jnp.ravel(w1).astype(jnp.float32),      # [0:4]
        jnp.ravel(gamma).astype(jnp.float32),   # [4]
        jnp.ravel(beta).astype(jnp.float32),    # [5]
        jnp.ravel(w2).astype(jnp.float32),      # [6:10]
        jnp.ravel(b2).astype(jnp.float32),      # [10]
        jnp.zeros((5,), jnp.float32),           # pad to 16
    ])


@jax.jit
def fused_forward(x_nchw, params):
    # x_nchw: (N, 1, H, W) f32;  params: (16,) f32 packed (see layout above)
    N, C, H, W = x_nchw.shape
    assert C == 1
    x = x_nchw.reshape(N, H, W)

    Ho, Wo = H - 1, W - 1
    Hp, Wp = Ho // 2, Wo // 2
    Ho2, Wo2 = Hp - 1, Wp - 1

    out_dil = pl.pallas_call(
        _fused_kernel,
        out_shape=jax.ShapeDtypeStruct((N, 2 * Ho2, 2 * Wo2), jnp.float32),
        in_specs=[pl.BlockSpec(memory_space=pltpu.MemorySpace.VMEM),
                  pl.BlockSpec(memory_space=pltpu.MemorySpace.SMEM)],
        out_specs=pl.BlockSpec(memory_space=pltpu.MemorySpace.VMEM),
    )(x, params)

    # Even-phase extraction + NCHW reshape: layout plumbing kept in XLA-land.
    return out_dil[:, ::2, ::2].reshape(N, 1, Ho2, Wo2)


def _reference(x, w1, b1, gamma, beta, w2, b2):
    # pure-JAX/XLA reference (NCHW), training-mode BN (biased variance)
    dn = ("NCHW", "OIHW", "NCHW")
    y = lax.conv_general_dilated(x, w1.reshape(1, 1, 2, 2), (1, 1), "VALID",
                                 dimension_numbers=dn) + b1
    mean = jnp.mean(y)
    var = jnp.mean((y - mean) ** 2)
    y = (y - mean) * lax.rsqrt(var + EPS) * gamma + beta
    pooled = lax.reduce_window(y, 0.0, lax.add, (1, 1, 2, 2), (1, 1, 2, 2),
                               "VALID") / 4.0
    z = lax.conv_general_dilated(pooled, w2.reshape(1, 1, 2, 2), (1, 1),
                                 "VALID", dimension_numbers=dn) + b2
    return jax.nn.sigmoid(z)


if __name__ == "__main__":
    key = jax.random.PRNGKey(0)
    kx, k1w, k1b, k2w, k2b = jax.random.split(key, 5)

    # input: NCHW, batch=2, channels=1, spatial=16
    x = jax.random.normal(kx, (2, 1, 16, 16), dtype=jnp.float32)

    # Conv2d(1,1,2) params: PyTorch-style uniform(-1/sqrt(fan_in), 1/sqrt(fan_in)),
    # fan_in = 1*2*2 = 4 -> bound 0.5  (deterministic via PRNGKey(0))
    bound = 0.5
    w1 = jax.random.uniform(k1w, (2, 2), jnp.float32, -bound, bound)
    b1 = jax.random.uniform(k1b, (1,), jnp.float32, -bound, bound)
    w2 = jax.random.uniform(k2w, (2, 2), jnp.float32, -bound, bound)
    b2 = jax.random.uniform(k2b, (1,), jnp.float32, -bound, bound)
    gamma = jnp.ones((1,), jnp.float32)   # BatchNorm2d affine init
    beta = jnp.zeros((1,), jnp.float32)

    # pack once (outside the hot path); b1 is not needed by the kernel.
    params = jax.block_until_ready(pack_params(w1, gamma, beta, w2, b2))

    out = fused_forward(x, params)
    out = jax.block_until_ready(out)

    ref = _reference(x, w1, b1, gamma, beta, w2, b2)
    assert out.shape == ref.shape == (2, 1, 6, 6)
    assert jnp.allclose(out, ref, atol=1e-5, rtol=1e-5), (
        float(jnp.max(jnp.abs(out - ref))))

    print("KERNEL_OK")
</pallas_src>

<mosaic_0001>
module attributes {stable_mosaic.version = 11 : i64} {
  func.func @_fused_kernel(%arg0: memref<2x16x16xf32, #tpu.memory_space<vmem>>, %arg1: memref<16xf32, #tpu.memory_space<smem>>, %arg2: memref<2x12x12xf32, #tpu.memory_space<vmem>>) attributes {dimension_semantics = [], scalar_prefetch = 0 : i64, scratch_operands = 0 : i64, tpu.core_type = #tpu.core_type<tc>} {
    %c0 = arith.constant 0 : index
    %c0_0 = arith.constant 0 : index
    %c0_1 = arith.constant 0 : index
    %0 = vector.load %arg0[%c0, %c0_0, %c0_1] : memref<2x16x16xf32, #tpu.memory_space<vmem>>, vector<2x16x16xf32>
    %1 = vector.extract_strided_slice %0 {offsets = [0, 0, 0], sizes = [2, 15, 15], strides = [1, 1, 1]} : vector<2x16x16xf32> to vector<2x15x15xf32>
    %c0_2 = arith.constant 0 : index
    %2 = memref.load %arg1[%c0_2] : memref<16xf32, #tpu.memory_space<smem>>
    %3 = vector.broadcast %2 : f32 to vector<2x15x15xf32>
    %4 = arith.mulf %1, %3 : vector<2x15x15xf32>
    %5 = vector.extract_strided_slice %0 {offsets = [0, 0, 1], sizes = [2, 15, 15], strides = [1, 1, 1]} : vector<2x16x16xf32> to vector<2x15x15xf32>
    %c1 = arith.constant 1 : index
    %6 = memref.load %arg1[%c1] : memref<16xf32, #tpu.memory_space<smem>>
    %7 = vector.broadcast %6 : f32 to vector<2x15x15xf32>
    %8 = arith.mulf %5, %7 : vector<2x15x15xf32>
    %9 = arith.addf %4, %8 : vector<2x15x15xf32>
    %10 = vector.extract_strided_slice %0 {offsets = [0, 1, 0], sizes = [2, 15, 15], strides = [1, 1, 1]} : vector<2x16x16xf32> to vector<2x15x15xf32>
    %c2 = arith.constant 2 : index
    %11 = memref.load %arg1[%c2] : memref<16xf32, #tpu.memory_space<smem>>
    %12 = vector.broadcast %11 : f32 to vector<2x15x15xf32>
    %13 = arith.mulf %10, %12 : vector<2x15x15xf32>
    %14 = arith.addf %9, %13 : vector<2x15x15xf32>
    %15 = vector.extract_strided_slice %0 {offsets = [0, 1, 1], sizes = [2, 15, 15], strides = [1, 1, 1]} : vector<2x16x16xf32> to vector<2x15x15xf32>
    %c3 = arith.constant 3 : index
    %16 = memref.load %arg1[%c3] : memref<16xf32, #tpu.memory_space<smem>>
    %17 = vector.broadcast %16 : f32 to vector<2x15x15xf32>
    %18 = arith.mulf %15, %17 : vector<2x15x15xf32>
    %19 = arith.addf %14, %18 : vector<2x15x15xf32>
    %20 = vector.shape_cast %19 : vector<2x15x15xf32> to vector<1x2x15x15xf32>
    %cst = arith.constant dense<0.000000e+00> : vector<1xf32>
    %21 = vector.multi_reduction <add>, %20, %cst [1, 2, 3] : vector<1x2x15x15xf32> to vector<1xf32>
    %22 = vector.shape_cast %21 : vector<1xf32> to vector<1x1x1x1xf32>
    %23 = vector.extract %22[0, 0, 0, 0] : f32 from vector<1x1x1x1xf32>
    %24 = arith.mulf %19, %19 : vector<2x15x15xf32>
    %25 = vector.shape_cast %24 : vector<2x15x15xf32> to vector<1x2x15x15xf32>
    %cst_3 = arith.constant dense<0.000000e+00> : vector<1xf32>
    %26 = vector.multi_reduction <add>, %25, %cst_3 [1, 2, 3] : vector<1x2x15x15xf32> to vector<1xf32>
    %27 = vector.shape_cast %26 : vector<1xf32> to vector<1x1x1x1xf32>
    %28 = vector.extract %27[0, 0, 0, 0] : f32 from vector<1x1x1x1xf32>
    %cst_4 = arith.constant 4.500000e+02 : f32
    %29 = arith.divf %23, %cst_4 : f32
    %cst_5 = arith.constant 4.500000e+02 : f32
    %30 = arith.divf %28, %cst_5 : f32
    %31 = arith.mulf %29, %29 : f32
    %32 = arith.subf %30, %31 : f32
    %cst_6 = arith.constant 0.000000e+00 : f32
    %33 = arith.maximumf %32, %cst_6 : f32
    %34 = vector.extract_strided_slice %19 {offsets = [0, 0, 0], sizes = [2, 15, 14], strides = [1, 1, 1]} : vector<2x15x15xf32> to vector<2x15x14xf32>
    %35 = vector.extract_strided_slice %19 {offsets = [0, 0, 1], sizes = [2, 15, 14], strides = [1, 1, 1]} : vector<2x15x15xf32> to vector<2x15x14xf32>
    %36 = arith.addf %34, %35 : vector<2x15x14xf32>
    %37 = vector.extract_strided_slice %36 {offsets = [0, 0, 0], sizes = [2, 14, 14], strides = [1, 1, 1]} : vector<2x15x14xf32> to vector<2x14x14xf32>
    %38 = vector.extract_strided_slice %36 {offsets = [0, 1, 0], sizes = [2, 14, 14], strides = [1, 1, 1]} : vector<2x15x14xf32> to vector<2x14x14xf32>
    %39 = arith.addf %37, %38 : vector<2x14x14xf32>
    %40 = vector.extract_strided_slice %39 {offsets = [0, 0, 0], sizes = [2, 12, 12], strides = [1, 1, 1]} : vector<2x14x14xf32> to vector<2x12x12xf32>
    %c6 = arith.constant 6 : index
    %41 = memref.load %arg1[%c6] : memref<16xf32, #tpu.memory_space<smem>>
    %42 = vector.broadcast %41 : f32 to vector<2x12x12xf32>
    %43 = arith.mulf %40, %42 : vector<2x12x12xf32>
    %44 = vector.extract_strided_slice %39 {offsets = [0, 0, 2], sizes = [2, 12, 12], strides = [1, 1, 1]} : vector<2x14x14xf32> to vector<2x12x12xf32>
    %c7 = arith.constant 7 : index
    %45 = memref.load %arg1[%c7] : memref<16xf32, #tpu.memory_space<smem>>
    %46 = vector.broadcast %45 : f32 to vector<2x12x12xf32>
    %47 = arith.mulf %44, %46 : vector<2x12x12xf32>
    %48 = arith.addf %43, %47 : vector<2x12x12xf32>
    %49 = vector.extract_strided_slice %39 {offsets = [0, 2, 0], sizes = [2, 12, 12], strides = [1, 1, 1]} : vector<2x14x14xf32> to vector<2x12x12xf32>
    %c8 = arith.constant 8 : index
    %50 = memref.load %arg1[%c8] : memref<16xf32, #tpu.memory_space<smem>>
    %51 = vector.broadcast %50 : f32 to vector<2x12x12xf32>
    %52 = arith.mulf %49, %51 : vector<2x12x12xf32>
    %53 = arith.addf %48, %52 : vector<2x12x12xf32>
    %54 = vector.extract_strided_slice %39 {offsets = [0, 2, 2], sizes = [2, 12, 12], strides = [1, 1, 1]} : vector<2x14x14xf32> to vector<2x12x12xf32>
    %c9 = arith.constant 9 : index
    %55 = memref.load %arg1[%c9] : memref<16xf32, #tpu.memory_space<smem>>
    %56 = vector.broadcast %55 : f32 to vector<2x12x12xf32>
    %57 = arith.mulf %54, %56 : vector<2x12x12xf32>
    %58 = arith.addf %53, %57 : vector<2x12x12xf32>
    %c4 = arith.constant 4 : index
    %59 = memref.load %arg1[%c4] : memref<16xf32, #tpu.memory_space<smem>>
    %cst_7 = arith.constant 9.99999974E-6 : f32
    %60 = arith.addf %33, %cst_7 : f32
    %61 = math.rsqrt %60 : f32
    %62 = arith.mulf %59, %61 : f32
    %c5 = arith.constant 5 : index
    %63 = memref.load %arg1[%c5] : memref<16xf32, #tpu.memory_space<smem>>
    %64 = arith.mulf %29, %62 : f32
    %65 = arith.subf %63, %64 : f32
    %c6_8 = arith.constant 6 : index
    %66 = memref.load %arg1[%c6_8] : memref<16xf32, #tpu.memory_space<smem>>
    %c7_9 = arith.constant 7 : index
    %67 = memref.load %arg1[%c7_9] : memref<16xf32, #tpu.memory_space<smem>>
    %68 = arith.addf %66, %67 : f32
    %c8_10 = arith.constant 8 : index
    %69 = memref.load %arg1[%c8_10] : memref<16xf32, #tpu.memory_space<smem>>
    %70 = arith.addf %68, %69 : f32
    %c9_11 = arith.constant 9 : index
    %71 = memref.load %arg1[%c9_11] : memref<16xf32, #tpu.memory_space<smem>>
    %72 = arith.addf %70, %71 : f32
    %73 = arith.mulf %65, %72 : f32
    %c10 = arith.constant 10 : index
    %74 = memref.load %arg1[%c10] : memref<16xf32, #tpu.memory_space<smem>>
    %75 = arith.addf %73, %74 : f32
    %cst_12 = arith.constant 2.500000e-01 : f32
    %76 = arith.mulf %62, %cst_12 : f32
    %77 = vector.broadcast %76 : f32 to vector<2x12x12xf32>
    %78 = arith.mulf %77, %58 : vector<2x12x12xf32>
    %79 = vector.broadcast %75 : f32 to vector<2x12x12xf32>
    %80 = arith.addf %78, %79 : vector<2x12x12xf32>
    %81 = arith.negf %80 : vector<2x12x12xf32>
    %82 = math.exp %81 : vector<2x12x12xf32>
    %cst_13 = arith.constant 1.000000e+00 : f32
    %83 = vector.broadcast %cst_13 : f32 to vector<2x12x12xf32>
    %84 = arith.addf %83, %82 : vector<2x12x12xf32>
    %85 = arith.divf %83, %84 : vector<2x12x12xf32>
    %c0_14 = arith.constant 0 : index
    %c0_15 = arith.constant 0 : index
    %c0_16 = arith.constant 0 : index
    %86 = vector.load %arg2[%c0_14, %c0_15, %c0_16] : memref<2x12x12xf32, #tpu.memory_space<vmem>>, vector<2x12x12xf32>
    tpu.vector_store %arg2[%c0_14, %c0_15, %c0_16], %85 {strides = array<i32>} : memref<2x12x12xf32, #tpu.memory_space<vmem>>, vector<2x12x12xf32>,
    return
  }
}

</mosaic_0001>

<bundles_post_ra>
// kernel: fused_forward.1
= control target key start
LH: loop header
LB: loop body
LE: loop exit
PB: predicated region body
PF: predicated region fallthrough
CT: control target
= control target key end

     0   :  { %7 = vsyncpa [#allocation3], 0  ;;  %s556_s0 = inlined_call_operand.hbm [shape: f32[2,16,16], index: 0, kind: input, shape index: {}]   ;;  %s557_s1 = inlined_call_operand.vmem [shape: f32[16], index: 1, kind: input, shape index: {}]   ;;  %s558_s2 = inlined_call_operand.vmem [shape: f32[2,12,12], index: 2, kind: output, shape index: {}]  }
   0x1   :  { %8 = vsyncpa [#allocation4], 0  ;;  %s448_s9 = smov [#allocation2]   ;;  %s27_s13 = sshll.u32 %s557_s1, 4  ;;  %s28_s13 = int_to_ptr.vmem [resolvable:$true] %s27_s13 }
   0x2   :  { %s14_s10 = sshll.u32 %s448_s9, 4  ;;  %s15_s10 = int_to_ptr.vmem [resolvable:$true] %s14_s10 }
   0x3   :  { %s420_s14 = scalar_lea.vmem %s15_s10, 512  ;;  %p425_p1 = scmp.lt.s32.totalorder %s15_s10, %s15_s10 }
   0x4   :  { %p421_p0 = scmp.ne.s32.totalorder %s15_s10, %s420_s14  ;;  %p426_p2 = scmp.lt.s32.totalorder %s420_s14, %s420_s14 }
   0x6   :  { %p427_p3 = por %p426_p2, %p425_p1 }
   0x8   :  { %p428_p4 = pnand %p427_p3, %p421_p0 }
   0xa   :  { %431 = shalt.err (!%p428_p4)
}
   0xb   :  { %s449_s15 = smov 128   ;;  %s450_s16 = smov 8  }
   0xc   :  { %20 = dma.hbm_to_vmem [thread:$0]  %s556_s0, 512, %s15_s10, [#allocation3], %s449_s15, %s449_s15, %s450_s16  }
   0xd   :  { %s432_s19 = scalar_lea.vmem %s28_s13, 16  ;;  %p437_p6 = scmp.lt.s32.totalorder %s28_s13, %s28_s13 }
   0xe   :  { %p433_p5 = scmp.ne.s32.totalorder %s28_s13, %s432_s19  ;;  %p438_p7 = scmp.lt.s32.totalorder %s432_s19, %s432_s19 }
  0x10   :  { %p439_p8 = por %p438_p7, %p437_p6 }
  0x12   :  { %p440_p9 = pnand %p439_p8, %p433_p5 }
  0x14   :  { %443 = shalt.err (!%p440_p9)
}
  0x15   :  { %s451_s1 = smov [#allocation5]  }
  0x16   :  { %30 = dma.vmem_to_smem %s28_s13, 16, %s451_s1, [#allocation4]  }
  0x17   :  { %444 = dma.done.wait [#allocation3], 512  }
  0x18   :  { %445 = vsyncadd [#allocation3], 4294966784 }
  0x19   :  { %446 = dma.done.wait [#allocation4], 16  }
  0x1a   :  { %447 = vsyncadd [#allocation4], 4294967280 }
  0x1b   :  { %37 = sfence }
  0x1c   :  { %s367_s20 = sld [smem:[#allocation5 + $0x1]]  ;;  %v40_v0 = vld [vmem:[#allocation2 + $0x10] sm:$0xff]  ;;  %v38_v1 = vld [vmem:[#allocation2] sm:$0xff]  ;;  %v41_v2 = vld [vmem:[#allocation2 + $0x18] sm:$0xff]  ;;  %s452_s0 = smov 127   ;;  %vm84_vm0 = vcmask 1046528  }
  0x1d   :  { %s369_s21 = sld [smem:[#allocation5 + $0x3]]  ;;  %v39_v3 = vld [vmem:[#allocation2 + $0x8] sm:$0xff]  ;;  %vm131_vm1 = vcmask 121856   ;;  %vm133_vm2 = vcmask 120832   ;;  %s453_s27 = smov 126   ;;  %vm258_vm3 = vcmask 1045504  }
  0x1e   :  { %s368_s22 = sld [smem:[#allocation5 + $0x2]]  ;;  %s454_s6 = smov 0.0   ;;  %vm357_vm4 = vcmask 93184   ;;  %vm355_vm5 = vcmask 97280  }
  0x1f   :  { %s42_s23 = sld [smem:[#allocation5]] }
  0x20   :  { %s500_s24 = sld [smem:[#allocation5 + $0x7]] }
  0x21   :  { %s502_s25 = sld [smem:[#allocation5 + $0x9]] }
  0x22   :  { %v49_v4 = vstv %s367_s20  ;;  %s504_s26 = sld [smem:[#allocation5 + $0x8]] }
  0x23   :  { %v52_v5 = vmul.f32 %v49_v4, %v40_v0  ;;  %v50_v6 = vmul.f32 %v49_v4, %v38_v1  ;;  %v53_v7 = vmul.f32 %v49_v4, %v41_v2  ;;  %v51_v8 = vmul.f32 %v49_v4, %v39_v3  ;;  %s370_s9 = sld [smem:[#allocation5 + $0x6]] }
  0x24   :  { %v100_v9 = vstv %s369_s21  ;;  %v75_v13 = vstv %s368_s22  ;;  %s374_s10 = sld [smem:[#allocation5 + $0x4]] }
  0x25   :  { %62 = vrot.lane.b32.xlu1 %v52_v5, %s452_s0  ;;  %58 = vrot.lane.b32.xlu0 %v50_v6, %s452_s0  ;;  %v102_v10 = vmul.f32 %v100_v9, %v39_v3  ;;  %v101_v11 = vmul.f32 %v100_v9, %v38_v1  ;;  %v104_v12 = vmul.f32 %v100_v9, %v41_v2  ;;  %v43_v31 = vstv %s42_s23  ;;  %s375_s12 = sld [smem:[#allocation5 + $0x5]] }
  0x26   :  { %v103_v14 = vmul.f32 %v100_v9, %v40_v0  ;;  %v77_v17 = vmul.f32 %v75_v13, %v39_v3  ;;  %v76_v18 = vmul.f32 %v75_v13, %v38_v1  ;;  %v79_v19 = vmul.f32 %v75_v13, %v41_v2  ;;  %s376_s16 = sld [smem:[#allocation5 + $0xa]] }
  0x27   :  { %v110_v15 = vrot.slane %v102_v10, 1  ;;  %v109_v16 = vrot.slane %v101_v11, 1  ;;  %v113_v20 = vrot.slane %v104_v12, 1  ;;  %v78_v22 = vmul.f32 %v75_v13, %v40_v0 }
  0x28   :  { %v112_v21 = vrot.slane %v103_v14, 1  ;;  %v86_v24 = vrot.slane %v77_v17, 1  ;;  %v85_v25 = vrot.slane %v76_v18, 1  ;;  %v89_v26 = vrot.slane %v79_v19, 1 }
  0x29   :  { %64 = vrot.lane.b32.xlu1 %v53_v7, %s452_s0  ;;  %60 = vrot.lane.b32.xlu0 %v51_v8, %s452_s0  ;;  %v111_v23 = vsel %vm84_vm0, %v109_v16, %v110_v15  ;;  %v88_v27 = vrot.slane %v78_v22, 1  ;;  %v46_v32 = vmul.f32 %v43_v31, %v40_v0  ;;  %v44_v33 = vmul.f32 %v43_v31, %v38_v1  ;;  %s314_s11 = sadd.f32 %s500_s24, %s370_s9 }
  0x2a   :  { %v87_v28 = vsel %vm84_vm0, %v85_v25, %v86_v24  ;;  %v114_v30 = vsel %vm84_vm0, %v112_v21, %v113_v20  ;;  %v45_v38 = vmul.f32 %v43_v31, %v39_v3  ;;  %v47_v39 = vmul.f32 %v43_v31, %v41_v2 }
  0x2b   :  { %v90_v29 = vsel %vm84_vm0, %v88_v27, %v89_v26  ;;  %s315_s13 = sadd.f32 %s504_s26, %s314_s11 }
  0x2d   :  { %117 = vrot.lane.b32.xlu1 %v110_v15, %s452_s0  ;;  %115 = vrot.lane.b32.xlu0 %v111_v23, %s452_s0  ;;  %s316_s18 = sadd.f32 %s502_s25, %s315_s13 }
  0x31   :  { %121 = vrot.lane.b32.xlu1 %v113_v20, %s452_s0  ;;  %119 = vrot.lane.b32.xlu0 %v114_v30, %s452_s0  ;;  %v223_v30 = vstv %s500_s24 }
  0x97   :  { %v63_v34 = vpop.permute.xlu1 %62  ;;  %v59_v35 = vpop.permute.xlu0 %58 }
  0x98   :  { %v72_v36 = vadd.f32 %v63_v34, %v46_v32  ;;  %v70_v37 = vadd.f32 %v59_v35, %v44_v33  ;;  %v274_v34 = vstv %s502_s25 }
  0x9a   :  { %v95_v40 = vadd.f32 %v87_v28, %v70_v37  ;;  %v97_v41 = vadd.f32 %v90_v29, %v72_v36 }
  0x9b   :  { %v65_v42 = vpop.permute.xlu1 %64  ;;  %v61_v43 = vpop.permute.xlu0 %60 }
  0x9c   :  { %v71_v44 = vadd.f32 %v61_v43, %v45_v38  ;;  %v73_v45 = vadd.f32 %v65_v42, %v47_v39  ;;  %v249_v38 = vstv %s504_s26 }
  0x9e   :  { %v96_v46 = vadd.f32 %v86_v24, %v71_v44  ;;  %v98_v51 = vadd.f32 %v89_v26, %v73_v45 }
  0x9f   :  { %v118_v47 = vpop.permute.xlu1 %117  ;;  %v116_v48 = vpop.permute.xlu0 %115 }
  0xa0   :  { %v128_v49 = vadd.f32 %v118_v47, %v96_v46  ;;  %v127_v50 = vadd.f32 %v116_v48, %v95_v40 }
  0xa2   :  { %v132_v52 = vsel %vm131_vm1, %v127_v50, 0.0  ;;  %v134_v53 = vsel %vm133_vm2, %v128_v49, 0.0  ;;  %v149_v54 = vmul.f32 %v127_v50, %v127_v50  ;;  %v150_v55 = vmul.f32 %v128_v49, %v128_v49 }
  0xa3   :  { %v122_v56 = vpop.permute.xlu1 %121  ;;  %v120_v57 = vpop.permute.xlu0 %119  ;;  %v135_v62 = vadd.f32 %v134_v53, %v132_v52 }
  0xa4   :  { %v130_v58 = vadd.f32 %v122_v56, %v98_v51  ;;  %v129_v59 = vadd.f32 %v120_v57, %v97_v41  ;;  %v153_v60 = vsel %vm131_vm1, %v149_v54, 0.0  ;;  %v154_v61 = vsel %vm133_vm2, %v150_v55, 0.0 }
  0xa5   :  { %v155_v3 = vadd.f32 %v154_v61, %v153_v60 }
  0xa6   :  { %v136_v63 = vsel %vm131_vm1, %v129_v59, 0.0  ;;  %v151_v0 = vmul.f32 %v129_v59, %v129_v59  ;;  %v152_v1 = vmul.f32 %v130_v58, %v130_v58  ;;  %v138_v4 = vsel %vm133_vm2, %v130_v58, 0.0 }
  0xa7   :  { %v137_v2 = vadd.f32 %v136_v63, %v135_v62 }
  0xa8   :  { %v156_v5 = vsel %vm131_vm1, %v151_v0, 0.0  ;;  %v158_v8 = vsel %vm133_vm2, %v152_v1, 0.0 }
  0xa9   :  { %v139_v6 = vadd.f32 %v138_v4, %v137_v2  ;;  %v157_v7 = vadd.f32 %v156_v5, %v155_v3 }
  0xab   :  { %140 = vadd.xlane.f32.xlu0 %v139_v6  ;;  %v159_v9 = vadd.f32 %v158_v8, %v157_v7  ;;  %v217_v7 = vstv %s370_s9 }
  0xad   :  { %160 = vadd.xlane.f32.xlu1 %v159_v9 }
  0xbe   :  { %184 = vrot.lane.b32.xlu1 %v128_v49, %s452_s0 }
  0xc1   :  { %182 = vrot.lane.b32.xlu0 %v127_v50, %s452_s0 }
  0xc2   :  { %188 = vrot.lane.b32.xlu1 %v130_v58, %s452_s0 }
  0xc5   :  { %186 = vrot.lane.b32.xlu0 %v129_v59, %s452_s0 }
 0x134   :  { %v141_v10 = vpop.xlane.xlu0 %140 }
 0x135   :  { %v142_v11 = vrot.slane %v141_v10, 4 }
 0x136   :  { %v161_v12 = vpop.xlane.xlu1 %160 }
 0x137   :  { %v143_v13 = vadd.f32 %v142_v11, %v141_v10  ;;  %v162_v14 = vrot.slane %v161_v12, 4 }
 0x138   :  { %v183_v15 = vpop.permute.xlu0 %182 }
 0x139   :  { %v144_v16 = vrot.slane %v143_v13, 2  ;;  %v163_v17 = vadd.f32 %v162_v14, %v161_v12  ;;  %v194_v18 = vadd.f32 %v183_v15, %v127_v50 }
 0x13a   :  { %v185_v19 = vpop.permute.xlu1 %184 }
 0x13b   :  { %v164_v20 = vrot.slane %v163_v17, 2  ;;  %v195_v21 = vadd.f32 %v185_v19, %v128_v49  ;;  %v145_v22 = vadd.f32 %v144_v16, %v143_v13  ;;  %v202_v23 = vrot.slane %v194_v18, 1 }
 0x13c   :  { %v187_v24 = vpop.permute.xlu0 %186 }
 0x13d   :  { %v203_v25 = vrot.slane %v195_v21, 1  ;;  %v196_v26 = vadd.f32 %v187_v24, %v129_v59  ;;  %v146_v27 = vrot.slane %v145_v22, 1  ;;  %v165_v28 = vadd.f32 %v164_v20, %v163_v17 }
 0x13e   :  { %v189_v29 = vpop.permute.xlu1 %188 }
 0x13f   :  { %v204_v31 = vsel %vm84_vm0, %v202_v23, %v203_v25  ;;  %v508_v32 = vadd.f32 %v203_v25, %v195_v21  ;;  %v197_v33 = vadd.f32 %v189_v29, %v130_v58  ;;  %v147_v36 = vadd.f32 %v146_v27, %v145_v22 }
 0x140   :  { %v212_v35 = vadd.f32 %v204_v31, %v194_v18  ;;  %v166_v37 = vrot.slane %v165_v28, 1  ;;  %v205_v39 = vrot.slane %v196_v26, 1 }
 0x141   :  { %v206_v40 = vrot.slane %v197_v33, 1  ;;  %v225_v41 = vmul.f32 %v223_v30, %v508_v32  ;;  %381 = vpush %v147_v36  ;;  %v276_v44 = vmul.f32 %v274_v34, %v508_v32  ;;  %v517_v48 = vmul.f32 %v249_v38, %v508_v32 }
 0x142   :  { %v167_v42 = vadd.f32 %v166_v37, %v165_v28  ;;  %v224_v43 = vmul.f32 %v223_v30, %v212_v35  ;;  %v275_v45 = vmul.f32 %v274_v34, %v212_v35  ;;  %v250_v50 = vmul.f32 %v249_v38, %v212_v35 }
 0x143   :  { %v207_v46 = vsel %vm84_vm0, %v205_v39, %v206_v40  ;;  %v215_v47 = vadd.f32 %v206_v40, %v197_v33  ;;  %234 = vrot.lane.b32.xlu1 %v225_v41, %s453_s27  ;;  %v260_v52 = vrot.slane %v517_v48, 2  ;;  %v284_v54 = vrot.slane %v276_v44, 2 }
 0x144   :  { %v214_v49 = vadd.f32 %v207_v46, %v196_v26  ;;  %383 = vpush %v167_v42  ;;  %232 = vrot.lane.b32.xlu0 %v224_v43, %s453_s27  ;;  %v283_v55 = vrot.slane %v275_v45, 2  ;;  %v259_v58 = vrot.slane %v250_v50, 2  ;;  %v218_v9 = vmul.f32 %v217_v7, %v212_v35 }
 0x145   :  { %v227_v51 = vmul.f32 %v223_v30, %v215_v47  ;;  %v278_v56 = vmul.f32 %v274_v34, %v215_v47  ;;  %v253_v59 = vmul.f32 %v249_v38, %v215_v47  ;;  %v221_v17 = vmul.f32 %v217_v7, %v215_v47 }
 0x146   :  { %v226_v53 = vmul.f32 %v223_v30, %v214_v49  ;;  %v277_v57 = vmul.f32 %v274_v34, %v214_v49  ;;  %v252_v60 = vmul.f32 %v249_v38, %v214_v49  ;;  %v261_v61 = vsel %vm258_vm3, %v259_v58, %v260_v52 }
 0x147   :  { %238 = vrot.lane.b32.xlu1 %v227_v51, %s453_s27  ;;  %v263_v62 = vrot.slane %v253_v59, 2  ;;  %v285_v0 = vsel %vm258_vm3, %v283_v55, %v284_v54  ;;  %v287_v1 = vrot.slane %v278_v56, 2  ;;  %v220_v13 = vmul.f32 %v217_v7, %v214_v49 }
 0x148   :  { %236 = vrot.lane.b32.xlu0 %v226_v53, %s453_s27  ;;  %v262_v63 = vrot.slane %v252_v60, 2  ;;  %v286_v2 = vrot.slane %v277_v57, 2  ;;  %v219_v20 = vmul.f32 %v217_v7, %v508_v32 }
 0x14a   :  { %v264_v3 = vsel %vm258_vm3, %v262_v63, %v263_v62  ;;  %v288_v4 = vsel %vm258_vm3, %v286_v2, %v287_v1 }
 0x14b   :  { %291 = vrot.lane.b32.xlu1 %v284_v54, %s453_s27 }
 0x14c   :  { %289 = vrot.lane.b32.xlu0 %v285_v0, %s453_s27 }
 0x14f   :  { %295 = vrot.lane.b32.xlu1 %v287_v1, %s453_s27 }
 0x150   :  { %293 = vrot.lane.b32.xlu0 %v288_v4, %s453_s27 }
 0x172   :  { %s382_s28 = spop %381 }
 0x173   :  { %s533_s29 = smul.f32 0.0022222223, %s382_s28 }
 0x175   :  { %s384_s30 = spop %383  ;;  %s175_s3 = smul.f32 %s533_s29, %s533_s29 }
 0x176   :  { %s174_s4 = smul.f32 0.0022222223, %s384_s30 }
 0x178   :  { %s176_s5 = ssub.f32 %s174_s4, %s175_s3 }
 0x17a   :  { %s177_s7 = smax.f32 %s454_s6, %s176_s5 }
 0x17b   :  { %s306_s8 = sadd.f32 1e-05, %s177_s7 }
 0x17d   :  { %v307_v5 = vstv %s306_s8 }
 0x17e   :  { %394 = vrsqrt.f32 %v307_v5 }
 0x18b   :  { %v395_v6 = vpop.eup %394 }
 0x18c   :  { %385 = vpush %v395_v6 }
 0x1b5   :  { %v235_v8 = vpop.permute.xlu1 %234 }
 0x1b6   :  { %v233_v10 = vpop.permute.xlu0 %232  ;;  %v245_v23 = vadd.f32 %v235_v8, %v219_v20 }
 0x1b7   :  { %v244_v11 = vadd.f32 %v233_v10, %v218_v9 }
 0x1b8   :  { %v270_v28 = vadd.f32 %v260_v52, %v245_v23 }
 0x1b9   :  { %v239_v12 = vpop.permute.xlu1 %238  ;;  %v269_v14 = vadd.f32 %v261_v61, %v244_v11 }
 0x1ba   :  { %v237_v15 = vpop.permute.xlu0 %236  ;;  %v247_v21 = vadd.f32 %v239_v12, %v221_v17 }
 0x1bb   :  { %v246_v16 = vadd.f32 %v237_v15, %v220_v13 }
 0x1bc   :  { %v272_v25 = vadd.f32 %v263_v62, %v247_v21 }
 0x1bd   :  { %v292_v18 = vpop.permute.xlu1 %291  ;;  %v271_v19 = vadd.f32 %v264_v3, %v246_v16  ;;  %s386_s14 = spop %385 }
 0x1be   :  { %v290_v22 = vpop.permute.xlu0 %289  ;;  %s310_s15 = smul.f32 %s386_s14, %s374_s10  ;;  %v302_v32 = vadd.f32 %v292_v18, %v270_v28 }
 0x1bf   :  { %v301_v29 = vadd.f32 %v290_v22, %v269_v14 }
 0x1c0   :  { %s312_s17 = smul.f32 %s310_s15, %s533_s29 }
 0x1c1   :  { %v296_v24 = vpop.permute.xlu1 %295  ;;  %s320_s19 = smul.f32 0.25, %s310_s15 }
 0x1c2   :  { %v294_v26 = vpop.permute.xlu0 %293  ;;  %s313_s1 = ssub.f32 %s375_s12, %s312_s17  ;;  %v304_v30 = vadd.f32 %v296_v24, %v272_v25 }
 0x1c3   :  { %v303_v27 = vadd.f32 %v294_v26, %v271_v19  ;;  %v321_v31 = vstv %s320_s19 }
 0x1c4   :  { %s317_s20 = smul.f32 %s316_s18, %s313_s1  ;;  %v323_v34 = vmul.f32 %v321_v31, %v302_v32  ;;  %v322_v35 = vmul.f32 %v321_v31, %v301_v29  ;;  %v325_v36 = vmul.f32 %v321_v31, %v304_v30 }
 0x1c5   :  { %v324_v33 = vmul.f32 %v321_v31, %v303_v27 }
 0x1c6   :  { %s319_s21 = sadd.f32 %s376_s16, %s317_s20 }
 0x1c8   :  { %v326_v37 = vstv %s319_s21 }
 0x1c9   :  { %v328_v38 = vadd.f32 %v326_v37, %v323_v34  ;;  %v327_v39 = vadd.f32 %v326_v37, %v322_v35  ;;  %v330_v40 = vadd.f32 %v326_v37, %v325_v36  ;;  %v329_v41 = vadd.f32 %v326_v37, %v324_v33 }
 0x1cb   :  { %v378_v42 = vmul.f32 -1.442695, %v328_v38  ;;  %v377_v43 = vmul.f32 -1.442695, %v327_v39  ;;  %v380_v44 = vmul.f32 -1.442695, %v330_v40 }
 0x1cc   :  { %v379_v45 = vmul.f32 -1.442695, %v329_v41 }
 0x1cd   :  { %396 = vpow2.f32 %v378_v42 }
 0x1ce   :  { %398 = vpow2.f32 %v377_v43 }
 0x1cf   :  { %400 = vpow2.f32 %v380_v44 }
 0x1d0   :  { %402 = vpow2.f32 %v379_v45 }
 0x1da   :  { %v397_v46 = vpop.eup %396 }
 0x1db   :  { %v399_v47 = vpop.eup %398  ;;  %v344_v48 = vadd.f32 1.0, %v397_v46 }
 0x1dc   :  { %v401_v49 = vpop.eup %400  ;;  %v343_v50 = vadd.f32 1.0, %v399_v47 }
 0x1dd   :  { %v403_v51 = vpop.eup %402  ;;  %404 = vrcp.f32 %v344_v48  ;;  %v346_v52 = vadd.f32 1.0, %v401_v49 }
 0x1de   :  { %406 = vrcp.f32 %v343_v50  ;;  %v345_v53 = vadd.f32 1.0, %v403_v51 }
 0x1df   :  { %408 = vrcp.f32 %v346_v52 }
 0x1e0   :  { %410 = vrcp.f32 %v345_v53 }
 0x1ea   :  { %v405_v54 = vpop.eup %404 }
 0x1eb   :  { %v407_v55 = vpop.eup %406  ;;  %358 = vst.msk [vmem:[%s558_s2 + $0x8] sm:$0xf] %vm357_vm4, %v405_v54 }
 0x1ec   :  { %v409_v56 = vpop.eup %408  ;;  %356 = vst.msk [vmem:[%s558_s2] sm:$0xff] %vm355_vm5, %v407_v55 }
 0x1ed   :  { %v411_v57 = vpop.eup %410  ;;  %360 = vst.msk [vmem:[%s558_s2 + $0x18] sm:$0xf] %vm357_vm4, %v409_v56 }
 0x1ee   :  { %359 = vst.msk [vmem:[%s558_s2 + $0x10] sm:$0xff] %vm355_vm5, %v411_v57 }
 0x1ef   :  { %365 = vsyncpa [#allocation3], 1 }
 0x1f0   :  { %366 = vsyncpa [#allocation4], 1 }

</bundles_post_ra>
